<compile_context>
chip_gen: v6e
topology: v6e:2x2x1
jax: 0.10.0
libtpu: 0.0.40
codegen_flags: <defaults>
</compile_context>

<pallas_src>
import jax
import jax.numpy as jnp
import numpy as np
from jax import lax
from jax.experimental import pallas as pl
from jax.experimental.pallas import tpu as pltpu


def _stats_kernel(n_ref, softmax_ref, label_ref,
                  trace_ref, true_ref, pred_ref,
                  trace_sc, true_sc, pred_sc):
    p = pl.program_id(0)          # batch chunk (parallel across v7x TCs)
    j = pl.program_id(1)          # tile within chunk (arbitrary / reduction)
    nj = pl.num_programs(1)
    tn, C = softmax_ref.shape

    @pl.when(j == 0)
    def _():
        trace_sc[...] = jnp.zeros_like(trace_sc)
        true_sc[...] = jnp.zeros_like(true_sc)
        pred_sc[...] = jnp.zeros_like(pred_sc)

    # Tile in its native HBM dtype (bf16 stays bf16 on the wire and in the
    # compares; Mosaic widens internally on v5e which has no bf16 VPU).
    s = softmax_ref[...]                                    # (tn, C)
    lbl = label_ref[...]                                    # (tn, 1) int32

    # Row-validity bound for this tile: handles the ragged tail and any
    # fully-padded (clamped) tiles created by the 2-way chunk split.
    row0 = (p * nj + j) * tn
    n_total = n_ref[0]
    row_ids = lax.broadcasted_iota(jnp.int32, (tn, 1), 0)
    valid = row_ids < (n_total - row0)                      # (tn, 1) bool

    # argmax over the class (lane) axis, first-index tie-break.
    cls = lax.broadcasted_iota(jnp.int32, (1, C), 1)        # grid-invariant
    mx = jnp.max(s, axis=-1, keepdims=True)                 # (tn, 1)
    pred = jnp.min(jnp.where(s == mx, cls, C), axis=-1, keepdims=True)

    # Sentinel masking on the (tn,1) columns only: invalid rows get pred=C and
    # lbl=-1, which never match a class index (0..C-1) nor each other, so the
    # (tn,C) one-hots need no extra full-width AND passes.
    pred = jnp.where(valid, pred, C)
    lbl = jnp.where(valid, lbl, -1)

    hit = (pred == lbl).astype(jnp.int32)                   # (tn, 1)
    onehot_t = (cls == lbl).astype(jnp.int32)               # (tn, C)
    onehot_p = (cls == pred).astype(jnp.int32)              # (tn, C)

    # Exact integer accumulation (counts exact up to 2^31).
    trace_sc[...] += jnp.sum(hit, axis=0, keepdims=True)
    true_sc[...] += jnp.sum(onehot_t, axis=0, keepdims=True)
    pred_sc[...] += jnp.sum(onehot_p, axis=0, keepdims=True)

    @pl.when(j == nj - 1)
    def _():
        trace_ref[0] = trace_sc[...]
        true_ref[0] = true_sc[...]
        pred_ref[0] = pred_sc[...]


def _pick_tile_n(N, C, itemsize, max_tile=16384, vmem_budget=24 * 1024 * 1024):
    """Largest batch tile keeping double-buffered inputs under ~24 MiB
    (vmem_limit_bytes is raised to 32 MiB; fine on v5e/v6e/v7x)."""
    c_pad = ((C + 127) // 128) * 128              # softmax lanes pad to 128
    # double-buffered softmax tile + double-buffered lane-padded label column
    per_row = 2 * (c_pad * itemsize + 128 * 4)
    t = min(max_tile, max(32, vmem_budget // per_row))
    t = (t // 32) * 32
    n_pad = ((N + 7) // 8) * 8                    # never exceed padded batch
    return max(8, min(t, n_pad))


def basic_classification_metric(output, targets, *, tile_n=None):
    """Pallas equivalent of BasicClassificationMetric.forward."""
    softmax = output["softmax"]                    # (N, C) f32/bf16 — no host cast
    labels = targets["label"].astype(jnp.int32)    # (N,)
    N, C = softmax.shape

    if tile_n is None:
        tile_n = _pick_tile_n(N, C, softmax.dtype.itemsize)
    tile_n = max(8, (tile_n // 8) * 8)

    total_steps = pl.cdiv(N, tile_n)
    num_chunks = 2 if total_steps >= 2 else 1      # feeds both v7x TensorCores
    steps_per_chunk = pl.cdiv(total_steps, num_chunks)
    last_blk = total_steps - 1
    needs_clamp = num_chunks * steps_per_chunk > total_steps

    def row_blk(p, j):
        blk = p * steps_per_chunk + j
        return jnp.minimum(blk, last_blk) if needs_clamp else blk

    labels2d = labels.reshape(N, 1)
    n_arr = jnp.array([N], dtype=jnp.int32)

    trace_pc, true_pc, pred_pc = pl.pallas_call(
        _stats_kernel,
        out_shape=(jax.ShapeDtypeStruct((num_chunks, 1, 1), jnp.int32),
                   jax.ShapeDtypeStruct((num_chunks, 1, C), jnp.int32),
                   jax.ShapeDtypeStruct((num_chunks, 1, C), jnp.int32)),
        grid_spec=pltpu.PrefetchScalarGridSpec(
            num_scalar_prefetch=1,
            grid=(num_chunks, steps_per_chunk),
            in_specs=[pl.BlockSpec((tile_n, C), lambda p, j, n: (row_blk(p, j), 0)),
                      pl.BlockSpec((tile_n, 1), lambda p, j, n: (row_blk(p, j), 0))],
            out_specs=[pl.BlockSpec((1, 1, 1), lambda p, j, n: (p, 0, 0)),
                       pl.BlockSpec((1, 1, C), lambda p, j, n: (p, 0, 0)),
                       pl.BlockSpec((1, 1, C), lambda p, j, n: (p, 0, 0))],
            scratch_shapes=[pltpu.VMEM((1, 1), jnp.int32),
                            pltpu.VMEM((1, C), jnp.int32),
                            pltpu.VMEM((1, C), jnp.int32)]),
        compiler_params=pltpu.CompilerParams(
            dimension_semantics=("parallel", "arbitrary"),
            vmem_limit_bytes=32 * 1024 * 1024),
    )(n_arr, softmax, labels2d)

    # Tiny finalize outside the kernel: sum the per-chunk exact int32 stats and
    # evaluate the two scalar metrics (micro accuracy + unweighted kappa).
    trace = jnp.sum(trace_pc).astype(jnp.float32)
    row = jnp.sum(true_pc, axis=(0, 1)).astype(jnp.float32)   # true-class counts
    col = jnp.sum(pred_pc, axis=(0, 1)).astype(jnp.float32)   # predicted counts
    n = jnp.float32(N)

    acc = trace / n
    num = n - trace
    den = n - jnp.sum(row * col) / n
    nonzero = den != 0.0
    kappa = 1.0 - jnp.where(nonzero, num / jnp.where(nonzero, den, 1.0), 0.0)
    return dict(acc=acc, kappa=kappa)


def _reference(softmax, labels):
    """Pure numpy reference (torchmetrics micro Accuracy + unweighted kappa)."""
    sm = np.asarray(jnp.asarray(softmax, jnp.float32))
    lb = np.asarray(labels)
    C = sm.shape[1]
    preds = sm.argmax(-1)
    conf = np.zeros((C, C), np.float64)
    for t, p in zip(lb, preds):
        conf[int(t), int(p)] += 1.0
    n = conf.sum()
    tr = np.trace(conf)
    row = conf.sum(1)
    col = conf.sum(0)
    acc = tr / n
    num = n - tr
    den = n - (row * col).sum() / n
    kappa = 1.0 - (num / den if den != 0.0 else 0.0)
    return acc, kappa


def _check(result, softmax, labels, tag):
    ref_acc, ref_kappa = _reference(softmax, labels)
    got_acc = float(result["acc"])
    got_kappa = float(result["kappa"])
    assert np.allclose(got_acc, ref_acc, atol=1e-5), (tag, got_acc, ref_acc)
    assert np.allclose(got_kappa, ref_kappa, atol=1e-5), (tag, got_kappa, ref_kappa)


if __name__ == "__main__":
    key = jax.random.PRNGKey(0)

    # ---- test 1: small f32 batch, N not a multiple of 8 (tail masking) ----
    N1, C1 = 57, 5
    k1, k2, k3, k4 = jax.random.split(key, 4)
    logits1 = jax.random.normal(k1, (N1, C1), dtype=jnp.float32)
    sm1 = jax.nn.softmax(logits1, axis=-1)
    lb1 = jax.random.randint(k2, (N1,), 0, C1, dtype=jnp.int32)
    res1 = basic_classification_metric({"softmax": sm1}, {"label": lb1})
    jax.block_until_ready(res1)
    _check(res1, sm1, lb1, "f32")

    # ---- test 2: bf16, forced small tile -> 2-chunk parallel split, ragged
    # tail, and one clamped (fully masked) tile in the second chunk ----
    N2, C2 = 300, 16
    logits2 = jax.random.normal(k3, (N2, C2), dtype=jnp.float32)
    sm2 = jax.nn.softmax(logits2, axis=-1).astype(jnp.bfloat16)
    lb2 = jax.random.randint(k4, (N2,), 0, C2, dtype=jnp.int32)
    res2 = basic_classification_metric({"softmax": sm2}, {"label": lb2},
                                       tile_n=64)   # 5 tiles -> grid (2, 3)
    jax.block_until_ready(res2)
    _check(res2, sm2, lb2, "bf16")

    # ---- test 3: degenerate single-class batch (kappa safe-divide path) ----
    N3, C3 = 16, 4
    sm3 = jnp.full((N3, C3), 0.1, jnp.float32).at[:, 2].set(0.7)
    lb3 = jnp.full((N3,), 2, jnp.int32)
    res3 = basic_classification_metric({"softmax": sm3}, {"label": lb3})
    jax.block_until_ready(res3)
    _check(res3, sm3, lb3, "degenerate")

    print("KERNEL_OK")
</pallas_src>

<mosaic_0001>
module attributes {stable_mosaic.version = 11 : i64} {
  func.func @_stats_kernel(%arg0: i32, %arg1: i32, %arg2: memref<1xi32, #tpu.memory_space<smem>>, %arg3: memref<64x5xf32, #tpu.memory_space<vmem>>, %arg4: memref<64x1xi32, #tpu.memory_space<vmem>>, %arg5: memref<1x1x1xi32, #tpu.memory_space<vmem>>, %arg6: memref<1x1x5xi32, #tpu.memory_space<vmem>>, %arg7: memref<1x1x5xi32, #tpu.memory_space<vmem>>, %arg8: memref<1x1xi32, #tpu.memory_space<vmem>>, %arg9: memref<1x5xi32, #tpu.memory_space<vmem>>, %arg10: memref<1x5xi32, #tpu.memory_space<vmem>>) attributes {dimension_semantics = [#tpu.dimension_semantics<parallel>, #tpu.dimension_semantics<arbitrary>], iteration_bounds = array<i64: 1, 1>, scalar_prefetch = 1 : i64, scratch_operands = 3 : i64, tpu.core_type = #tpu.core_type<tc>, window_params = [{transform_indices = @transform_0, window_bounds = array<i64: 64, 5>}, {transform_indices = @transform_1, window_bounds = array<i64: 64, 1>}, {transform_indices = @transform_2, window_bounds = array<i64: 1, 1, 1>}, {transform_indices = @transform_3, window_bounds = array<i64: 1, 1, 5>}, {transform_indices = @transform_4, window_bounds = array<i64: 1, 1, 5>}]} {
    %c0_i32 = arith.constant 0 : i32
    %0 = arith.cmpi eq, %arg1, %c0_i32 : i32
    %1 = arith.extui %0 : i1 to i32
    %c0_i32_0 = arith.constant 0 : i32
    %2 = arith.cmpi ne, %1, %c0_i32_0 : i32
    scf.if %2 {
      %c0_i32_24 = arith.constant 0 : i32
      %56 = vector.broadcast %c0_i32_24 : i32 to vector<1x1xi32>
      %c0_25 = arith.constant 0 : index
      %c0_26 = arith.constant 0 : index
      %57 = vector.load %arg8[%c0_25, %c0_26] : memref<1x1xi32, #tpu.memory_space<vmem>>, vector<1x1xi32>
      tpu.vector_store %arg8[%c0_25, %c0_26], %56 {strides = array<i32>} : memref<1x1xi32, #tpu.memory_space<vmem>>, vector<1x1xi32>,
      %c0_i32_27 = arith.constant 0 : i32
      %58 = vector.broadcast %c0_i32_27 : i32 to vector<1x5xi32>
      %c0_28 = arith.constant 0 : index
      %c0_29 = arith.constant 0 : index
      %59 = vector.load %arg9[%c0_28, %c0_29] : memref<1x5xi32, #tpu.memory_space<vmem>>, vector<1x5xi32>
      tpu.vector_store %arg9[%c0_28, %c0_29], %58 {strides = array<i32>} : memref<1x5xi32, #tpu.memory_space<vmem>>, vector<1x5xi32>,
      %c0_i32_30 = arith.constant 0 : i32
      %60 = vector.broadcast %c0_i32_30 : i32 to vector<1x5xi32>
      %c0_31 = arith.constant 0 : index
      %c0_32 = arith.constant 0 : index
      %61 = vector.load %arg10[%c0_31, %c0_32] : memref<1x5xi32, #tpu.memory_space<vmem>>, vector<1x5xi32>
      tpu.vector_store %arg10[%c0_31, %c0_32], %60 {strides = array<i32>} : memref<1x5xi32, #tpu.memory_space<vmem>>, vector<1x5xi32>,
    } else {
    }
    %c0 = arith.constant 0 : index
    %c0_1 = arith.constant 0 : index
    %3 = vector.load %arg3[%c0, %c0_1] : memref<64x5xf32, #tpu.memory_space<vmem>>, vector<64x5xf32>
    %c0_2 = arith.constant 0 : index
    %c0_3 = arith.constant 0 : index
    %4 = vector.load %arg4[%c0_2, %c0_3] : memref<64x1xi32, #tpu.memory_space<vmem>>, vector<64x1xi32>
    %c1_i32 = arith.constant 1 : i32
    %5 = arith.muli %arg0, %c1_i32 : i32
    %6 = arith.addi %5, %arg1 : i32
    %c64_i32 = arith.constant 64 : i32
    %7 = arith.muli %6, %c64_i32 : i32
    %c0_4 = arith.constant 0 : index
    %8 = memref.load %arg2[%c0_4] : memref<1xi32, #tpu.memory_space<smem>>
    %9 = tpu.iota {dimensions = array<i32: 0>} : vector<64x1xi32>
    %10 = arith.subi %8, %7 : i32
    %11 = vector.broadcast %10 : i32 to vector<64x1xi32>
    %12 = arith.cmpi slt, %9, %11 : vector<64x1xi32>
    %13 = tpu.iota {dimensions = array<i32: 1>} : vector<1x5xi32>
    %cst = arith.constant dense<0xFF800000> : vector<64xf32>
    %14 = vector.multi_reduction <maximumf>, %3, %cst [1] : vector<64x5xf32> to vector<64xf32>
    %15 = vector.shape_cast %14 : vector<64xf32> to vector<64x1xf32>
    %16 = vector.broadcast %15 : vector<64x1xf32> to vector<64x5xf32>
    %17 = arith.cmpf oeq, %3, %16 : vector<64x5xf32>
    %c5_i32 = arith.constant 5 : i32
    %18 = vector.shape_cast %13 : vector<1x5xi32> to vector<1x5xi32>
    %19 = vector.broadcast %18 : vector<1x5xi32> to vector<64x5xi32>
    %20 = vector.broadcast %c5_i32 : i32 to vector<64x5xi32>
    %21 = arith.select %17, %19, %20 : vector<64x5xi1>, vector<64x5xi32>
    %cst_5 = arith.constant dense<2147483647> : vector<64xi32>
    %22 = vector.multi_reduction <minsi>, %21, %cst_5 [1] : vector<64x5xi32> to vector<64xi32>
    %23 = vector.shape_cast %22 : vector<64xi32> to vector<64x1xi32>
    %c5_i32_6 = arith.constant 5 : i32
    %24 = vector.broadcast %c5_i32_6 : i32 to vector<64x1xi32>
    %25 = arith.select %12, %23, %24 : vector<64x1xi1>, vector<64x1xi32>
    %c-1_i32 = arith.constant -1 : i32
    %26 = vector.broadcast %c-1_i32 : i32 to vector<64x1xi32>
    %27 = arith.select %12, %4, %26 : vector<64x1xi1>, vector<64x1xi32>
    %28 = arith.cmpi eq, %25, %27 : vector<64x1xi32>
    %29 = arith.extui %28 : vector<64x1xi1> to vector<64x1xi32>
    %30 = vector.broadcast %13 : vector<1x5xi32> to vector<64x5xi32>
    %31 = vector.broadcast %27 : vector<64x1xi32> to vector<64x5xi32>
    %32 = arith.cmpi eq, %30, %31 : vector<64x5xi32>
    %33 = arith.extui %32 : vector<64x5xi1> to vector<64x5xi32>
    %34 = vector.broadcast %13 : vector<1x5xi32> to vector<64x5xi32>
    %35 = vector.broadcast %25 : vector<64x1xi32> to vector<64x5xi32>
    %36 = arith.cmpi eq, %34, %35 : vector<64x5xi32>
    %37 = arith.extui %36 : vector<64x5xi1> to vector<64x5xi32>
    %c0_7 = arith.constant 0 : index
    %c0_8 = arith.constant 0 : index
    %38 = vector.load %arg8[%c0_7, %c0_8] : memref<1x1xi32, #tpu.memory_space<vmem>>, vector<1x1xi32>
    %cst_9 = arith.constant dense<0> : vector<1xi32>
    %39 = vector.multi_reduction <add>, %29, %cst_9 [0] : vector<64x1xi32> to vector<1xi32>
    %40 = vector.shape_cast %39 : vector<1xi32> to vector<1x1xi32>
    %41 = arith.addi %38, %40 : vector<1x1xi32>
    %c0_10 = arith.constant 0 : index
    %c0_11 = arith.constant 0 : index
    %42 = vector.load %arg8[%c0_10, %c0_11] : memref<1x1xi32, #tpu.memory_space<vmem>>, vector<1x1xi32>
    tpu.vector_store %arg8[%c0_10, %c0_11], %41 {strides = array<i32>} : memref<1x1xi32, #tpu.memory_space<vmem>>, vector<1x1xi32>,
    %c0_12 = arith.constant 0 : index
    %c0_13 = arith.constant 0 : index
    %43 = vector.load %arg9[%c0_12, %c0_13] : memref<1x5xi32, #tpu.memory_space<vmem>>, vector<1x5xi32>
    %cst_14 = arith.constant dense<0> : vector<5xi32>
    %44 = vector.multi_reduction <add>, %33, %cst_14 [0] : vector<64x5xi32> to vector<5xi32>
    %45 = vector.shape_cast %44 : vector<5xi32> to vector<1x5xi32>
    %46 = arith.addi %43, %45 : vector<1x5xi32>
    %c0_15 = arith.constant 0 : index
    %c0_16 = arith.constant 0 : index
    %47 = vector.load %arg9[%c0_15, %c0_16] : memref<1x5xi32, #tpu.memory_space<vmem>>, vector<1x5xi32>
    tpu.vector_store %arg9[%c0_15, %c0_16], %46 {strides = array<i32>} : memref<1x5xi32, #tpu.memory_space<vmem>>, vector<1x5xi32>,
    %c0_17 = arith.constant 0 : index
    %c0_18 = arith.constant 0 : index
    %48 = vector.load %arg10[%c0_17, %c0_18] : memref<1x5xi32, #tpu.memory_space<vmem>>, vector<1x5xi32>
    %cst_19 = arith.constant dense<0> : vector<5xi32>
    %49 = vector.multi_reduction <add>, %37, %cst_19 [0] : vector<64x5xi32> to vector<5xi32>
    %50 = vector.shape_cast %49 : vector<5xi32> to vector<1x5xi32>
    %51 = arith.addi %48, %50 : vector<1x5xi32>
    %c0_20 = arith.constant 0 : index
    %c0_21 = arith.constant 0 : index
    %52 = vector.load %arg10[%c0_20, %c0_21] : memref<1x5xi32, #tpu.memory_space<vmem>>, vector<1x5xi32>
    tpu.vector_store %arg10[%c0_20, %c0_21], %51 {strides = array<i32>} : memref<1x5xi32, #tpu.memory_space<vmem>>, vector<1x5xi32>,
    %c0_i32_22 = arith.constant 0 : i32
    %53 = arith.cmpi eq, %arg1, %c0_i32_22 : i32
    %54 = arith.extui %53 : i1 to i32
    %c0_i32_23 = arith.constant 0 : i32
    %55 = arith.cmpi ne, %54, %c0_i32_23 : i32
    scf.if %55 {
      %c0_24 = arith.constant 0 : index
      %c0_25 = arith.constant 0 : index
      %56 = vector.load %arg8[%c0_24, %c0_25] : memref<1x1xi32, #tpu.memory_space<vmem>>, vector<1x1xi32>
      %c0_26 = arith.constant 0 : index
      %c0_27 = arith.constant 0 : index
      %c0_28 = arith.constant 0 : index
      %57 = vector.load %arg5[%c0_26, %c0_27, %c0_28] : memref<1x1x1xi32, #tpu.memory_space<vmem>>, vector<1x1x1xi32>
      %58 = vector.shape_cast %57 : vector<1x1x1xi32> to vector<1x1xi32>
      %59 = vector.shape_cast %56 : vector<1x1xi32> to vector<1x1x1xi32>
      tpu.vector_store %arg5[%c0_26, %c0_27, %c0_28], %59 {strides = array<i32>} : memref<1x1x1xi32, #tpu.memory_space<vmem>>, vector<1x1x1xi32>,
      %c0_29 = arith.constant 0 : index
      %c0_30 = arith.constant 0 : index
      %60 = vector.load %arg9[%c0_29, %c0_30] : memref<1x5xi32, #tpu.memory_space<vmem>>, vector<1x5xi32>
      %c0_31 = arith.constant 0 : index
      %c0_32 = arith.constant 0 : index
      %c0_33 = arith.constant 0 : index
      %61 = vector.load %arg6[%c0_31, %c0_32, %c0_33] : memref<1x1x5xi32, #tpu.memory_space<vmem>>, vector<1x1x5xi32>
      %62 = vector.shape_cast %61 : vector<1x1x5xi32> to vector<1x5xi32>
      %63 = vector.shape_cast %60 : vector<1x5xi32> to vector<1x1x5xi32>
      tpu.vector_store %arg6[%c0_31, %c0_32, %c0_33], %63 {strides = array<i32>} : memref<1x1x5xi32, #tpu.memory_space<vmem>>, vector<1x1x5xi32>,
      %c0_34 = arith.constant 0 : index
      %c0_35 = arith.constant 0 : index
      %64 = vector.load %arg10[%c0_34, %c0_35] : memref<1x5xi32, #tpu.memory_space<vmem>>, vector<1x5xi32>
      %c0_36 = arith.constant 0 : index
      %c0_37 = arith.constant 0 : index
      %c0_38 = arith.constant 0 : index
      %65 = vector.load %arg7[%c0_36, %c0_37, %c0_38] : memref<1x1x5xi32, #tpu.memory_space<vmem>>, vector<1x1x5xi32>
      %66 = vector.shape_cast %65 : vector<1x1x5xi32> to vector<1x5xi32>
      %67 = vector.shape_cast %64 : vector<1x5xi32> to vector<1x1x5xi32>
      tpu.vector_store %arg7[%c0_36, %c0_37, %c0_38], %67 {strides = array<i32>} : memref<1x1x5xi32, #tpu.memory_space<vmem>>, vector<1x1x5xi32>,
    } else {
    }
    return
  }
  func.func @transform_0(%arg0: i32, %arg1: i32, %arg2: memref<1xi32, #tpu.memory_space<smem>>) -> (i32, i32) {
    %c1_i32 = arith.constant 1 : i32
    %0 = arith.muli %arg0, %c1_i32 : i32
    %1 = arith.addi %0, %arg1 : i32
    %c0_i32 = arith.constant 0 : i32
    %c0_i32_0 = arith.constant 0 : i32
    return %1, %c0_i32 : i32, i32
  }
  func.func @transform_1(%arg0: i32, %arg1: i32, %arg2: memref<1xi32, #tpu.memory_space<smem>>) -> (i32, i32) {
    %c1_i32 = arith.constant 1 : i32
    %0 = arith.muli %arg0, %c1_i32 : i32
    %1 = arith.addi %0, %arg1 : i32
    %c0_i32 = arith.constant 0 : i32
    %c0_i32_0 = arith.constant 0 : i32
    return %1, %c0_i32 : i32, i32
  }
  func.func @transform_2(%arg0: i32, %arg1: i32, %arg2: memref<1xi32, #tpu.memory_space<smem>>) -> (i32, i32, i32) {
    %c0_i32 = arith.constant 0 : i32
    %c0_i32_0 = arith.constant 0 : i32
    %c0_i32_1 = arith.constant 0 : i32
    return %arg0, %c0_i32, %c0_i32_0 : i32, i32, i32
  }
  func.func @transform_3(%arg0: i32, %arg1: i32, %arg2: memref<1xi32, #tpu.memory_space<smem>>) -> (i32, i32, i32) {
    %c0_i32 = arith.constant 0 : i32
    %c0_i32_0 = arith.constant 0 : i32
    %c0_i32_1 = arith.constant 0 : i32
    return %arg0, %c0_i32, %c0_i32_0 : i32, i32, i32
  }
  func.func @transform_4(%arg0: i32, %arg1: i32, %arg2: memref<1xi32, #tpu.memory_space<smem>>) -> (i32, i32, i32) {
    %c0_i32 = arith.constant 0 : i32
    %c0_i32_0 = arith.constant 0 : i32
    %c0_i32_1 = arith.constant 0 : i32
    return %arg0, %c0_i32, %c0_i32_0 : i32, i32, i32
  }
}

</mosaic_0001>

<bundles_post_ra>
// kernel: tpu_custom_call.1
= control target key start
LH: loop header
LB: loop body
LE: loop exit
PB: predicated region body
PF: predicated region fallthrough
CT: control target
= control target key end

     0   :  { %12 = vsyncpa [#allocation8], 0  ;;  %vm111_vm0 = vcmask 39936   ;;  %s946_s0 = inlined_call_operand.<no memory space> [shape: s32[1], index: 0, kind: input, shape index: {}]   ;;  %s947_s1 = inlined_call_operand.vmem [shape: f32[57,5], index: 1, kind: input, shape index: {}]   ;;  %s948_s2 = inlined_call_operand.vmem [shape: s32[57,1], index: 2, kind: input, shape index: {}]   ;;  %s949_s3 = inlined_call_operand.hbm [shape: s32[1,1,1], index: 3, kind: output, shape index: {0}]   ;;  %s950_s4 = inlined_call_operand.hbm [shape: s32[1,1,5], index: 4, kind: output, shape index: {1}]   ;;  %s951_s5 = inlined_call_operand.hbm [shape: s32[1,1,5], index: 5, kind: output, shape index: {2}]  }
   0x1   :  { %v71_v0 = vld [vmem:[%s947_s1] sm:$0xff]  ;;  %v73_v1 = vld [vmem:[%s947_s1 + $0x10] sm:$0xff]  ;;  %v72_v2 = vld [vmem:[%s947_s1 + $0x8] sm:$0xff] }
   0x2   :  { %v112_v3 = vsel %vm111_vm0, %v71_v0, -inf  ;;  %v118_v4 = vsel %vm111_vm0, %v73_v1, -inf  ;;  %v74_v5 = vld [vmem:[%s947_s1 + $0x18] sm:$0xff]  ;;  %v115_v6 = vsel %vm111_vm0, %v72_v2, -inf }
   0x3   :  { %113 = vmax.xlane.f32.xlu0 %v112_v3  ;;  %119 = vmax.xlane.f32.xlu1 %v118_v4  ;;  %v121_v7 = vsel %vm111_vm0, %v74_v5, -inf }
   0x4   :  { %13 = vsyncpa [#allocation10], 0  ;;  %v75_v8 = vld [vmem:[%s947_s1 + $0x20] sm:$0xff]  ;;  %v76_v9 = vld [vmem:[%s947_s1 + $0x28] sm:$0xff]  ;;  %v90_v16 = vlaneseq  ;;  %v567_v58 = vmov 0   ;;  %s569_s26 = smov [#allocation7]  }
   0x5   :  { %v124_v10 = vsel %vm111_vm0, %v75_v8, -inf  ;;  %v127_v11 = vsel %vm111_vm0, %v76_v9, -inf  ;;  %v77_v12 = vld [vmem:[%s947_s1 + $0x30] sm:$0xff]  ;;  %v78_v13 = vld [vmem:[%s947_s1 + $0x38] sm:$0xff]  ;;  %502 = vset.pattern.permute.xlu1 %v567_v58  ;;  %501 = vset.pattern.permute.xlu0 %v567_v58  ;;  %s450_s27 = sshll.u32 %s569_s26, 4  ;;  %s570_s28 = smov [#allocation11]   ;;  %s451_s27 = int_to_ptr.vmem [resolvable:$true] %s450_s27 }
   0x6   :  { %v130_v14 = vsel %vm111_vm0, %v77_v12, -inf  ;;  %v133_v15 = vsel %vm111_vm0, %v78_v13, -inf  ;;  %v634_v17 = vand.u32 127, %v90_v16  ;;  %s470_s29 = sshll.u32 %s570_s28, 4  ;;  %s927_s29 = int_to_ptr.vmem [resolvable:$true] %s470_s29 }
   0x7   :  { %116 = vmax.xlane.f32.xlu0 %v115_v6  ;;  %122 = vmax.xlane.f32.xlu1 %v121_v7 }
   0xb   :  { %125 = vmax.xlane.f32.xlu0 %v124_v10  ;;  %128 = vmax.xlane.f32.xlu1 %v127_v11 }
   0xf   :  { %131 = vmax.xlane.f32.xlu0 %v130_v14  ;;  %134 = vmax.xlane.f32.xlu1 %v133_v15 }
  0x8c   :  { %v114_v18 = vpop.xlane.xlu0 %113  ;;  %v120_v19 = vpop.xlane.xlu1 %119 }
  0x8d   :  { %vm136_vm1 = vcmp.eq.f32.partialorder %v71_v0, %v114_v18  ;;  %vm138_vm2 = vcmp.eq.f32.partialorder %v73_v1, %v120_v19 }
  0x8e   :  { %v144_v20 = vsel %vm136_vm1, %v634_v17, 5  ;;  %v146_v21 = vsel %vm138_vm2, %v634_v17, 5 }
  0x8f   :  { %v152_v22 = vsel %vm111_vm0, %v144_v20, 2147483647  ;;  %v640_v23 = vsel %vm111_vm0, %v146_v21, 2147483647 }
  0x90   :  { %v117_v24 = vpop.xlane.xlu0 %116  ;;  %v123_v25 = vpop.xlane.xlu1 %122  ;;  %v154_v26 = vshra.s32 %v152_v22, 16  ;;  %v184_v27 = vshra.s32 %v640_v23, 16  ;;  %v153_v59 = vand.u32 65535, %v152_v22  ;;  %v183_v63 = vand.u32 65535, %v640_v23 }
  0x91   :  { %vm137_vm3 = vcmp.eq.f32.partialorder %v72_v2, %v117_v24  ;;  %vm139_vm4 = vcmp.eq.f32.partialorder %v74_v5, %v123_v25  ;;  %v690_v25 = vshrl.u32 %v90_v16, 7 }
  0x92   :  { %v145_v28 = vsel %vm137_vm3, %v634_v17, 5  ;;  %v147_v29 = vsel %vm139_vm4, %v634_v17, 5  ;;  %v156_v30 = vcvt.s32.f32 %v154_v26  ;;  %v186_v35 = vcvt.s32.f32 %v184_v27 }
  0x93   :  { %v167_v31 = vsel %vm111_vm0, %v145_v28, 2147483647  ;;  %v647_v32 = vsel %vm111_vm0, %v147_v29, 2147483647  ;;  %v155_v61 = vcvt.s32.f32 %v153_v59  ;;  %v185_v4 = vcvt.s32.f32 %v183_v63  ;;  %v80_v28 = vld [vmem:[%s948_s2 + $0x8] sm:$0xff] }
  0x94   :  { %157 = vmin.xlane.f32.xlu0 %v156_v30  ;;  %v126_v33 = vpop.xlane.xlu0 %125  ;;  %v129_v34 = vpop.xlane.xlu1 %128  ;;  %v169_v36 = vshra.s32 %v167_v31, 16  ;;  %v199_v37 = vshra.s32 %v647_v32, 16  ;;  %v168_v62 = vand.u32 65535, %v167_v31  ;;  %v198_v5 = vand.u32 65535, %v647_v32  ;;  %v79_v32 = vld [vmem:[%s948_s2] sm:$0xff] }
  0x95   :  { %vm140_vm5 = vcmp.eq.f32.partialorder %v75_v8, %v126_v33  ;;  %vm141_vm6 = vcmp.eq.f32.partialorder %v76_v9, %v129_v34  ;;  %v693_v26 = vadd.s32 8, %v690_v25  ;;  %v698_v27 = vstv %s946_s0  ;;  %v82_v34 = vld [vmem:[%s948_s2 + $0x18] sm:$0xff] }
  0x96   :  { %v148_v38 = vsel %vm140_vm5, %v634_v17, 5  ;;  %v149_v39 = vsel %vm141_vm6, %v634_v17, 5  ;;  %v171_v40 = vcvt.s32.f32 %v169_v36  ;;  %v201_v45 = vcvt.s32.f32 %v199_v37 }
  0x97   :  { %v212_v41 = vsel %vm111_vm0, %v148_v38, 2147483647  ;;  %v227_v42 = vsel %vm111_vm0, %v149_v39, 2147483647  ;;  %v170_v3 = vcvt.s32.f32 %v168_v62  ;;  %v200_v11 = vcvt.s32.f32 %v198_v5  ;;  %v83_v38 = vld [vmem:[%s948_s2 + $0x20] sm:$0xff] }
  0x98   :  { %187 = vmin.xlane.f32.xlu0 %v186_v35  ;;  %172 = vmin.xlane.f32.xlu1 %v171_v40  ;;  %v132_v43 = vpop.xlane.xlu0 %131  ;;  %v135_v44 = vpop.xlane.xlu1 %134  ;;  %v214_v46 = vshra.s32 %v212_v41, 16  ;;  %v229_v47 = vshra.s32 %v227_v42, 16  ;;  %v213_v6 = vand.u32 65535, %v212_v41  ;;  %vm102_vm1 = vcmp.lt.s32.totalorder %v693_v26, %v698_v27  ;;  %v84_v41 = vld [vmem:[%s948_s2 + $0x28] sm:$0xff] }
  0x99   :  { %vm142_vm7 = vcmp.eq.f32.partialorder %v77_v12, %v132_v43  ;;  %vm143_vm8 = vcmp.eq.f32.partialorder %v78_v13, %v135_v44  ;;  %v228_v13 = vand.u32 65535, %v227_v42  ;;  %v706_v29 = vadd.s32 16, %v690_v25  ;;  %v85_v44 = vld [vmem:[%s948_s2 + $0x30] sm:$0xff] }
  0x9a   :  { %v150_v48 = vsel %vm142_vm7, %v634_v17, 5  ;;  %v151_v49 = vsel %vm143_vm8, %v634_v17, 5  ;;  %v216_v50 = vcvt.s32.f32 %v214_v46  ;;  %v231_v53 = vcvt.s32.f32 %v229_v47 }
  0x9b   :  { %v242_v51 = vsel %vm111_vm0, %v150_v48, 2147483647  ;;  %v658_v52 = vsel %vm111_vm0, %v151_v49, 2147483647  ;;  %v215_v12 = vcvt.s32.f32 %v213_v6  ;;  %v230_v21 = vcvt.s32.f32 %v228_v13 }
  0x9c   :  { %202 = vmin.xlane.f32.xlu1 %v201_v45  ;;  %217 = vmin.xlane.f32.xlu0 %v216_v50  ;;  %v244_v54 = vshra.s32 %v242_v51, 16  ;;  %v259_v55 = vshra.s32 %v658_v52, 16  ;;  %v243_v14 = vand.u32 65535, %v242_v51  ;;  %v711_v16 = vsel %vm102_vm1, %v80_v28, 4294967295  ;;  %v86_v51 = vld [vmem:[%s948_s2 + $0x38] sm:$0xff] }
  0x9d   :  { %vm103_vm2 = vcmp.lt.s32.totalorder %v706_v29, %v698_v27  ;;  %v719_v31 = vadd.s32 24, %v690_v25  ;;  %vm101_vm3 = vcmp.lt.s32.totalorder %v690_v25, %v698_v27  ;;  %v755_v39 = vadd.s32 40, %v690_v25 }
  0x9e   :  { %v246_v56 = vcvt.s32.f32 %v244_v54  ;;  %v661_v57 = vcvt.s32.f32 %v259_v55  ;;  %v245_v22 = vcvt.s32.f32 %v243_v14  ;;  %v280_v36 = vsel %vm101_vm3, %v79_v32, 4294967295 }
  0x9f   :  { %vm104_vm4 = vcmp.lt.s32.totalorder %v719_v31, %v698_v27  ;;  %vm106_vm6 = vcmp.lt.s32.totalorder %v755_v39, %v698_v27  ;;  %v769_v42 = vadd.s32 48, %v690_v25  ;;  %v258_v47 = vand.u32 65535, %v658_v52 }
  0xa0   :  { %232 = vmin.xlane.f32.xlu1 %v231_v53  ;;  %247 = vmin.xlane.f32.xlu0 %v246_v56  ;;  %v747_v37 = vsel %vm104_vm4, %v82_v34, 4294967295  ;;  %v775_v43 = vsel %vm106_vm6, %v84_v41, 4294967295 }
  0xa1   :  { %vm107_vm7 = vcmp.lt.s32.totalorder %v769_v42, %v698_v27  ;;  %v260_v48 = vcvt.s32.f32 %v258_v47 }
  0xa4   :  { %262 = vmin.xlane.f32.xlu1 %v661_v57 }
 0x11d   :  { %v666_v60 = vpop.xlane.xlu0 %157 }
 0x11e   :  { %vm159_vm9 = vcmp.eq.f32.partialorder %v156_v30, %v666_v60  ;;  %v81_v30 = vld [vmem:[%s948_s2 + $0x10] sm:$0xff]  ;;  %s568_s2 = smov [#allocation9]  }
 0x11f   :  { %v160_v0 = vsel %vm159_vm9, %v155_v61, inf  ;;  %v730_v33 = vsel %vm103_vm2, %v81_v30, 4294967295  ;;  %s460_s25 = sshll.u32 %s568_s2, 4  ;;  %s461_s25 = int_to_ptr.vmem [resolvable:$true] %s460_s25 }
 0x120   :  { %161 = vmin.xlane.f32.xlu0 %v160_v0  ;;  %s503_s30 = scalar_lea.vmem %s461_s25, 16  ;;  %s507_s6 = scalar_lea.vmem %s461_s25, 32 }
 0x121   :  { %v670_v1 = vpop.xlane.xlu1 %172  ;;  %v672_v2 = vpop.xlane.xlu0 %187  ;;  %p504_p0 = scmp.ne.s32.totalorder %s461_s25, %s503_s30  ;;  %p508_p1 = scmp.lt.s32.totalorder %s461_s25, %s461_s25 }
 0x122   :  { %vm174_vm10 = vcmp.eq.f32.partialorder %v171_v40, %v670_v1  ;;  %vm189_vm11 = vcmp.eq.f32.partialorder %v186_v35, %v672_v2  ;;  %v738_v35 = vadd.s32 32, %v690_v25  ;;  %p509_p2 = scmp.lt.s32.totalorder %s507_s6, %s503_s30 }
 0x123   :  { %v175_v7 = vsel %vm174_vm10, %v170_v3, inf  ;;  %v190_v8 = vsel %vm189_vm11, %v185_v4, inf  ;;  %vm68_vm10 = vcmask 32768   ;;  %vm66_vm11 = vcmask 0  }
 0x124   :  { %176 = vmin.xlane.f32.xlu1 %v175_v7  ;;  %191 = vmin.xlane.f32.xlu0 %v190_v8  ;;  %vm105_vm5 = vcmp.lt.s32.totalorder %v738_v35, %v698_v27  ;;  %69 = vst.msk [vmem:[#allocation3] sm:$0x1] %vm68_vm10, %v567_v58  ;;  %70 = vst.msk [vmem:[#allocation4] sm:$0x1] %vm68_vm10, %v567_v58  ;;  %p510_p3 = por %p509_p2, %p508_p1 }
 0x125   :  { %v677_v9 = vpop.xlane.xlu1 %202  ;;  %v679_v10 = vpop.xlane.xlu0 %217  ;;  %v761_v40 = vsel %vm105_vm5, %v83_v38, 4294967295  ;;  %67 = vst.msk [vmem:[#allocation2] sm:$0x1] %vm66_vm11, %v567_v58 }
 0x126   :  { %vm204_vm12 = vcmp.eq.f32.partialorder %v201_v45, %v677_v9  ;;  %vm219_vm13 = vcmp.eq.f32.partialorder %v216_v50, %v679_v10  ;;  %v786_v45 = vsel %vm107_vm7, %v85_v44, 4294967295  ;;  %v795_v50 = vadd.s32 56, %v690_v25  ;;  %p511_p4 = pnand %p510_p3, %p504_p0 }
 0x127   :  { %v205_v15 = vsel %vm204_vm12, %v200_v11, inf  ;;  %v220_v18 = vsel %vm219_vm13, %v215_v12, inf  ;;  %v224_v3 = vcvt.f32.s32 %v679_v10 }
 0x128   :  { %206 = vmin.xlane.f32.xlu1 %v205_v15  ;;  %221 = vmin.xlane.f32.xlu0 %v220_v18  ;;  %vm108_vm9 = vcmp.lt.s32.totalorder %v795_v50, %v698_v27 }
 0x129   :  { %v683_v19 = vpop.xlane.xlu1 %232  ;;  %v685_v20 = vpop.xlane.xlu0 %247  ;;  %v805_v52 = vsel %vm108_vm9, %v86_v51, 4294967295  ;;  %v225_v11 = vshll.u32 %v224_v3, 16 }
 0x12a   :  { %vm234_vm14 = vcmp.eq.f32.partialorder %v231_v53, %v683_v19  ;;  %vm249_vm15 = vcmp.eq.f32.partialorder %v246_v56, %v685_v20  ;;  %v164_v53 = vcvt.f32.s32 %v666_v60  ;;  %v239_v60 = vcvt.f32.s32 %v683_v19 }
 0x12b   :  { %v235_v23 = vsel %vm234_vm14, %v230_v21, inf  ;;  %v250_v24 = vsel %vm249_vm15, %v245_v22, inf  ;;  %vm361_vm14 = vcmask 7168  }
 0x12c   :  { %236 = vmin.xlane.f32.xlu1 %v235_v23  ;;  %251 = vmin.xlane.f32.xlu0 %v250_v24  ;;  %v165_v56 = vshll.u32 %v164_v53, 16  ;;  %v240_v10 = vshll.u32 %v239_v60, 16 }
 0x12d   :  { %v789_v46 = vpop.xlane.xlu1 %262 }
 0x12e   :  { %vm264_vm8 = vcmp.eq.f32.partialorder %v661_v57, %v789_v46  ;;  %v179_v57 = vcvt.f32.s32 %v670_v1 }
 0x12f   :  { %v265_v49 = vsel %vm264_vm8, %v260_v48, inf }
 0x130   :  { %v180_v0 = vshll.u32 %v179_v57, 16 }
 0x13d   :  { %308 = vperm.xlu1 %502, %v711_v16  }
 0x141   :  { %311 = vperm.xlu1 %502, %v730_v33  }
 0x142   :  { %305 = vperm.xlu0 %501, %v280_v36  }
 0x145   :  { %314 = vperm.xlu1 %502, %v747_v37  }
 0x149   :  { %317 = vperm.xlu1 %502, %v761_v40  }
 0x14d   :  { %320 = vperm.xlu1 %502, %v775_v43  }
 0x151   :  { %323 = vperm.xlu1 %502, %v786_v45  }
 0x175   :  { %266 = vmin.xlane.f32.xlu1 %v265_v49 }
 0x186   :  { %326 = vperm.xlu1 %502, %v805_v52  }
 0x1a9   :  { %v162_v54 = vpop.xlane.xlu0 %161 }
 0x1aa   :  { %v163_v55 = vcvt.f32.s32 %v162_v54  ;;  %v194_v54 = vcvt.f32.s32 %v672_v2 }
 0x1ac   :  { %v166_v59 = vadd.s32 %v165_v56, %v163_v55  ;;  %v195_v57 = vshll.u32 %v194_v54, 16 }
 0x1ad   :  { %v177_v61 = vpop.xlane.xlu1 %176  ;;  %v192_v62 = vpop.xlane.xlu0 %191 }
 0x1ae   :  { %v178_v63 = vcvt.f32.s32 %v177_v61  ;;  %v272_v4 = vsel %vm101_vm3, %v166_v59, 5  ;;  %v193_v56 = vcvt.f32.s32 %v192_v62  ;;  %v209_v59 = vcvt.f32.s32 %v677_v9 }
 0x1af   :  { %vm288_vm12 = vcmp.eq.s32.totalorder %v272_v4, %v280_v36  ;;  %vm344_vm13 = vcmp.eq.s32.totalorder %v634_v17, %v272_v4  ;;  %v269_v9 = vcvt.f32.s32 %v789_v46 }
 0x1b0   :  { %v181_v5 = vadd.s32 %v180_v0, %v178_v63  ;;  %v296_v15 = vsel %vm288_vm12, 1, %v567_v58  ;;  %v352_v18 = vsel %vm344_vm13, 1, %v567_v58  ;;  %v196_v61 = vadd.s32 %v195_v57, %v193_v56 }
 0x1b1   :  { %v207_v6 = vpop.xlane.xlu1 %206  ;;  %v222_v7 = vpop.xlane.xlu0 %221  ;;  %v362_v22 = vsel %vm361_vm14, %v296_v15, 0  ;;  %v412_v25 = vsel %vm111_vm0, %v352_v18, 0  ;;  %v254_v0 = vcvt.f32.s32 %v685_v20 }
 0x1b2   :  { %v223_v8 = vcvt.f32.s32 %v222_v7  ;;  %v273_v1 = vsel %vm102_vm1, %v181_v5, 5  ;;  %v208_v4 = vcvt.f32.s32 %v207_v6  ;;  %v210_v7 = vshll.u32 %v209_v59, 16 }
 0x1b3   :  { %vm289_vm15 = vcmp.eq.s32.totalorder %v273_v1, %v711_v16  ;;  %vm345_vm3 = vcmp.eq.s32.totalorder %v634_v17, %v273_v1  ;;  %v274_v60 = vsel %vm103_vm2, %v196_v61, 5 }
 0x1b4   :  { %v226_v13 = vadd.s32 %v225_v11, %v223_v8  ;;  %v297_v26 = vsel %vm289_vm15, 1, %v567_v58  ;;  %v353_v30 = vsel %vm345_vm3, 1, %v567_v58  ;;  %v255_v8 = vshll.u32 %v254_v0, 16 }
 0x1b5   :  { %v237_v12 = vpop.xlane.xlu1 %236  ;;  %v413_v41 = vsel %vm111_vm0, %v353_v30, 0  ;;  %v252_v63 = vpop.xlane.xlu0 %251  ;;  %v211_v11 = vadd.s32 %v210_v7, %v208_v4  ;;  %vm346_vm13 = vcmp.eq.s32.totalorder %v634_v17, %v274_v60 }
 0x1b6   :  { %v238_v14 = vcvt.f32.s32 %v237_v12  ;;  %v276_v19 = vsel %vm105_vm5, %v226_v13, 5  ;;  %v253_v5 = vcvt.f32.s32 %v252_v63  ;;  %v354_v1 = vsel %vm346_vm13, 1, %v567_v58 }
 0x1b7   :  { %vm292_vm1 = vcmp.eq.s32.totalorder %v276_v19, %v761_v40  ;;  %vm348_vm8 = vcmp.eq.s32.totalorder %v634_v17, %v276_v19  ;;  %v363_v40 = vsel %vm361_vm14, %v297_v26, 0  ;;  %v275_v6 = vsel %vm104_vm4, %v211_v11, 5 }
 0x1b8   :  { %v241_v21 = vadd.s32 %v240_v10, %v238_v14  ;;  %v300_v23 = vsel %vm292_vm1, 1, %v567_v58  ;;  %v356_v24 = vsel %vm348_vm8, 1, %v567_v58  ;;  %v256_v2 = vadd.s32 %v255_v8, %v253_v5 }
 0x1b9   :  { %v366_v28 = vsel %vm361_vm14, %v300_v23, 0  ;;  %v416_v16 = vsel %vm111_vm0, %v356_v24, 0  ;;  %vm291_vm2 = vcmp.eq.s32.totalorder %v275_v6, %v747_v37  ;;  %vm347_vm15 = vcmp.eq.s32.totalorder %v634_v17, %v275_v6 }
 0x1ba   :  { %v367_v32 = vadd.s32 %v366_v28, %v362_v22  ;;  %v417_v34 = vadd.s32 %v416_v16, %v412_v25  ;;  %v277_v35 = vsel %vm106_vm6, %v241_v21, 5  ;;  %vm290_vm6 = vcmp.eq.s32.totalorder %v274_v60, %v730_v33 }
 0x1bb   :  { %vm293_vm5 = vcmp.eq.s32.totalorder %v277_v35, %v775_v43  ;;  %vm349_vm12 = vcmp.eq.s32.totalorder %v634_v17, %v277_v35  ;;  %v309_v43 = vpop.permute.xlu1 %308  ;;  %v298_v20 = vsel %vm290_vm6, 1, %v567_v58  ;;  %v278_v29 = vsel %vm107_vm7, %v256_v2, 5 }
 0x1bc   :  { %v301_v36 = vsel %vm293_vm5, 1, %v567_v58  ;;  %v357_v38 = vsel %vm349_vm12, 1, %v567_v58  ;;  %v270_v33 = vshll.u32 %v269_v9, 16  ;;  %v364_v10 = vsel %vm361_vm14, %v298_v20, 0 }
 0x1bd   :  { %v368_v44 = vsel %vm361_vm14, %v301_v36, 0  ;;  %v418_v47 = vsel %vm111_vm0, %v357_v38, 0  ;;  %v306_v12 = vpop.permute.xlu0 %305  ;;  %vm294_vm3 = vcmp.eq.s32.totalorder %v278_v29, %v786_v45  ;;  %vm350_vm1 = vcmp.eq.s32.totalorder %v634_v17, %v278_v29 }
 0x1be   :  { %v369_v48 = vadd.s32 %v368_v44, %v363_v40  ;;  %v419_v49 = vadd.s32 %v418_v47, %v413_v41  ;;  %vm329_vm4 = vcmp.eq.s32.totalorder %v634_v17, %v309_v43  ;;  %v414_v31 = vsel %vm111_vm0, %v354_v1, 0 }
 0x1bf   :  { %v312_v53 = vpop.permute.xlu1 %311  ;;  %vm328_vm12 = vcmp.eq.s32.totalorder %v634_v17, %v306_v12  ;;  %v299_v37 = vsel %vm291_vm2, 1, %v567_v58  ;;  %v355_v42 = vsel %vm347_vm15, 1, %v567_v58  ;;  %v302_v45 = vsel %vm294_vm3, 1, %v567_v58 }
 0x1c0   :  { %v853_v39 = vadd.s32 %v369_v48, %v367_v32  ;;  %v855_v51 = vadd.s32 %v419_v49, %v417_v34  ;;  %vm330_vm7 = vcmp.eq.s32.totalorder %v634_v17, %v312_v53  ;;  %v358_v13 = vsel %vm350_vm1, 1, %v567_v58 }
 0x1c1   :  { %v337_v14 = vsel %vm329_vm4, 1, %v567_v58  ;;  %v338_v19 = vsel %vm330_vm7, 1, %v567_v58  ;;  %v336_v22 = vsel %vm328_vm12, 1, %v567_v58  ;;  %v365_v24 = vsel %vm361_vm14, %v299_v37, 0  ;;  %v386_v37 = vld [vmem:[#allocation3] sm:$0x1] }
 0x1c2   :  { %v415_v25 = vsel %vm111_vm0, %v355_v42, 0  ;;  %v370_v16 = vsel %vm361_vm14, %v302_v45, 0  ;;  %v420_v30 = vsel %vm111_vm0, %v358_v13, 0  ;;  %v388_v35 = vsel %vm111_vm0, %v337_v14, 0  ;;  %v360_v13 = vld [vmem:[#allocation2] sm:$0x1] }
 0x1c3   :  { %v315_v55 = vpop.permute.xlu1 %314  ;;  %v389_v36 = vsel %vm111_vm0, %v338_v19, 0  ;;  %v387_v40 = vsel %vm111_vm0, %v336_v22, 0  ;;  %v371_v61 = vadd.s32 %v370_v16, %v364_v10  ;;  %v421_v63 = vadd.s32 %v420_v30, %v414_v31 }
 0x1c4   :  { %vm331_vm6 = vcmp.eq.s32.totalorder %v634_v17, %v315_v55 }
 0x1c5   :  { %v339_v26 = vsel %vm331_vm6, 1, %v567_v58 }
 0x1c6   :  { %v390_v44 = vsel %vm111_vm0, %v339_v26, 0 }
 0x1c7   :  { %v318_v3 = vpop.permute.xlu1 %317 }
 0x1c8   :  { %vm332_vm5 = vcmp.eq.s32.totalorder %v634_v17, %v318_v3 }
 0x1c9   :  { %v340_v21 = vsel %vm332_vm5, 1, %v567_v58 }
 0x1ca   :  { %v391_v38 = vsel %vm111_vm0, %v340_v21, 0 }
 0x1cb   :  { %v321_v62 = vpop.permute.xlu1 %320  ;;  %v392_v53 = vadd.s32 %v391_v38, %v387_v40 }
 0x1cc   :  { %vm333_vm8 = vcmp.eq.s32.totalorder %v634_v17, %v321_v62 }
 0x1cd   :  { %v341_v15 = vsel %vm333_vm8, 1, %v567_v58 }
 0x1ce   :  { %v393_v32 = vsel %vm111_vm0, %v341_v15, 0 }
 0x1cf   :  { %v324_v46 = vpop.permute.xlu1 %323  ;;  %v394_v49 = vadd.s32 %v393_v32, %v388_v35 }
 0x1d0   :  { %vm334_vm13 = vcmp.eq.s32.totalorder %v634_v17, %v324_v46 }
 0x1d1   :  { %v342_v28 = vsel %vm334_vm13, 1, %v567_v58 }
 0x1d2   :  { %v395_v47 = vsel %vm111_vm0, %v342_v28, 0 }
 0x1d3   :  { %v396_v57 = vadd.s32 %v395_v47, %v389_v36 }
 0x1fe   :  { %v267_v18 = vpop.xlane.xlu1 %266 }
 0x1ff   :  { %v268_v23 = vcvt.f32.s32 %v267_v18 }
 0x201   :  { %v271_v34 = vadd.s32 %v270_v33, %v268_v23 }
 0x202   :  { %v327_v41 = vpop.permute.xlu1 %326 }
 0x203   :  { %v279_v48 = vsel %vm108_vm9, %v271_v34, 5  ;;  %vm335_vm2 = vcmp.eq.s32.totalorder %v634_v17, %v327_v41 }
 0x204   :  { %vm295_vm15 = vcmp.eq.s32.totalorder %v279_v48, %v805_v52  ;;  %vm351_vm3 = vcmp.eq.s32.totalorder %v634_v17, %v279_v48  ;;  %v343_v43 = vsel %vm335_vm2, 1, %v567_v58  ;;  %v399_v17 = vadd.s32 %v394_v49, %v392_v53 }
 0x205   :  { %v303_v54 = vsel %vm295_vm15, 1, %v567_v58  ;;  %v359_v55 = vsel %vm351_vm3, 1, %v567_v58  ;;  %v397_v56 = vsel %vm111_vm0, %v343_v43, 0 }
 0x206   :  { %v372_v27 = vsel %vm361_vm14, %v303_v54, 0  ;;  %v422_v50 = vsel %vm111_vm0, %v359_v55, 0  ;;  %v398_v59 = vadd.s32 %v397_v56, %v390_v44 }
 0x207   :  { %v373_v52 = vadd.s32 %v372_v27, %v365_v24  ;;  %v423_v0 = vadd.s32 %v422_v50, %v415_v25 }
 0x208   :  { %v400_v3 = vadd.s32 %v398_v59, %v396_v57 }
 0x209   :  { %v375_v4 = vadd.s32 %v373_v52, %v371_v61  ;;  %v425_v5 = vadd.s32 %v423_v0, %v421_v63 }
 0x20a   :  { %v401_v7 = vadd.s32 %v400_v3, %v399_v17 }
 0x20b   :  { %v376_v60 = vadd.s32 %v375_v4, %v853_v39  ;;  %v426_v58 = vadd.s32 %v425_v5, %v855_v51  ;;  %v411_v39 = vld [vmem:[#allocation4] sm:$0x1] }
 0x20c   :  { %v402_v8 = vrot.slane %v401_v7, 4 }
 0x20d   :  { %v377_v11 = vrot.slane %v376_v60, 4  ;;  %v427_v2 = vrot.slane %v426_v58, 4 }
 0x20e   :  { %v403_v62 = vadd.s32 %v402_v8, %v401_v7 }
 0x20f   :  { %v378_v9 = vadd.s32 %v377_v11, %v376_v60  ;;  %v428_v20 = vadd.s32 %v427_v2, %v426_v58 }
 0x210   :  { %v404_v6 = vrot.slane %v403_v62, 2 }
 0x211   :  { %v379_v29 = vrot.slane %v378_v9, 2  ;;  %v429_v1 = vrot.slane %v428_v20, 2 }
 0x212   :  { %v405_v12 = vadd.s32 %v404_v6, %v403_v62 }
 0x213   :  { %v430_v33 = vadd.s32 %v429_v1, %v428_v20  ;;  %v380_v10 = vadd.s32 %v379_v29, %v378_v9 }
 0x214   :  { %v406_v46 = vrot.slane %v405_v12, 1 }
 0x215   :  { %v431_v31 = vrot.slane %v430_v33, 1  ;;  %v381_v42 = vrot.slane %v380_v10, 1 }
 0x216   :  { %v407_v45 = vadd.s32 %v406_v46, %v405_v12 }
 0x217   :  { %v432_v51 = vadd.s32 %v431_v31, %v430_v33  ;;  %v382_v14 = vadd.s32 %v381_v42, %v380_v10 }
 0x218   :  { %v408_v15 = vadd.s32 %v407_v45, %v386_v37 }
 0x219   :  { %v433_v18 = vadd.s32 %v432_v51, %v411_v39  ;;  %v383_v19 = vadd.s32 %v382_v14, %v360_v13 }
 0x21a   :  { %410 = vst.msk [vmem:[#allocation3] sm:$0x1] %vm68_vm10, %v408_v15 }
 0x21b   :  { %434 = vst.msk [vmem:[#allocation4] sm:$0x1] %vm68_vm10, %v433_v18 }
 0x21c   :  { %385 = vst.msk [vmem:[#allocation2] sm:$0x1] %vm66_vm11, %v383_v19 }
 0x221   :  { %v440_v21 = vld [vmem:[#allocation3] sm:$0x1] }
 0x222   :  { %441 = vst.msk [vmem:[#allocation9] sm:$0x1] %vm68_vm10, %v440_v21  ;;  %v442_v23 = vld [vmem:[#allocation4] sm:$0x1] }
 0x223   :  { %v438_v22 = vld [vmem:[#allocation2] sm:$0x1] }
 0x224   :  { %514 = shalt.err (!%p511_p4)
}
 0x225   :  { %463 = dma.vmem_to_hbm [thread:$0]  %s461_s25, 16, %s950_s4, [#allocation10]   ;;  %439 = vst.msk [vmem:[#allocation7] sm:$0x1] %vm66_vm11, %v438_v22 }
 0x226   :  { %443 = vst.msk [vmem:[#allocation11] sm:$0x1] %vm68_vm10, %v442_v23  ;;  %s523_s1 = scalar_lea.vmem %s451_s27, 16  ;;  %s527_s9 = scalar_lea.vmem %s451_s27, 32 }
 0x227   :  { %p524_p5 = scmp.ne.s32.totalorder %s451_s27, %s523_s1  ;;  %p528_p6 = scmp.lt.s32.totalorder %s451_s27, %s451_s27 }
 0x228   :  { %p529_p7 = scmp.lt.s32.totalorder %s527_s9, %s523_s1 }
 0x22a   :  { %p530_p8 = por %p529_p7, %p528_p6 }
 0x22c   :  { %p531_p9 = pnand %p530_p8, %p524_p5 }
 0x22e   :  { %534 = shalt.err (!%p531_p9)
}
 0x22f   :  { %453 = dma.vmem_to_hbm [thread:$0]  %s451_s27, 16, %s949_s3, [#allocation8]  }
 0x230   :  { %s543_s4 = scalar_lea.vmem %s927_s29, 16  ;;  %s547_s12 = scalar_lea.vmem %s927_s29, 32 }
 0x231   :  { %p544_p10 = scmp.ne.s32.totalorder %s927_s29, %s543_s4  ;;  %p548_p11 = scmp.lt.s32.totalorder %s927_s29, %s927_s29 }
 0x232   :  { %p549_p12 = scmp.lt.s32.totalorder %s547_s12, %s543_s4 }
 0x234   :  { %p550_p13 = por %p549_p12, %p548_p11 }
 0x236   :  { %p551_p0 = pnand %p550_p13, %p544_p10 }
 0x238   :  { %554 = shalt.err (!%p551_p0)
}
 0x239   :  { %473 = dma.vmem_to_hbm [thread:$0]  %s927_s29, 16, %s951_s5, [#allocation10]  }
 0x23a   :  { %563 = dma.done.wait [#allocation8], 16  }
 0x23b   :  { %564 = vsyncadd [#allocation8], 4294967280 }
 0x23c   :  { %565 = dma.done.wait [#allocation10], 32  }
 0x23d   :  { %566 = vsyncadd [#allocation10], 4294967264 }
 0x23e   :  { %483 = vsyncpa [#allocation8], 1 }
 0x23f   :  { %484 = vsyncpa [#allocation10], 1 }

</bundles_post_ra>
